<compile_context>
chip_gen: v6e
topology: v6e:2x2x1
jax: 0.10.0
libtpu: 0.0.40
codegen_flags: <defaults>
</compile_context>

<pallas_src>
import jax
import jax.numpy as jnp
from jax.experimental import pallas as pl
from jax.experimental.pallas import tpu as pltpu


def _multilayer_kernel(x_ref, w1_ref, w2_ref, o_ref):
    """Lane-dense fused forward for N instances of the same MultiLayer module.

    x_ref : (B, N*ni)      batch on sublanes, instance*feature on lanes
    w1_ref: (N*ni, N*nh)   block-diagonal replication of W1^T
    w2_ref: (N*nh, N*no)   block-diagonal replication of W2^T
    o_ref : (B, N*no)
    """
    x = x_ref[...]
    h = jnp.tanh(jnp.dot(x, w1_ref[...], preferred_element_type=jnp.float32))
    y = jnp.dot(h, w2_ref[...], preferred_element_type=jnp.float32)

    # Per-(instance, output) softmax over the batch axis = plain axis-0
    # (sublane) reduction; exact divide so rows sum to 1 to f32 rounding.
    m = jnp.max(y, axis=0, keepdims=True)            # XLU sublane reduce
    e = jnp.exp(y - m)                                # EUP
    denom = jnp.sum(e, axis=0, keepdims=True)         # XLU sublane reduce
    o_ref[...] = (e / denom).astype(o_ref.dtype)


@jax.jit
def multilayer_forward_batched(x, w1, w2):
    """x : (N, B, num_inputs) — N independent forwards of the same module.
    w1: (num_hidden, num_inputs), w2: (num_outputs, num_hidden)  (nn.Linear layout).
    Returns (N, B, num_outputs) float32; softmax over each instance's batch axis."""
    n, b, ni = x.shape
    nh, ki = w1.shape
    no, kh = w2.shape
    assert ki == ni and kh == nh

    # Lane-dense layout: batch on sublanes, instance*feature on lanes.
    x_flat = jnp.transpose(x, (1, 0, 2)).reshape(b, n * ni)      # (B, N*ni)
    eye = jnp.eye(n, dtype=jnp.float32)
    w1_bd = jnp.kron(eye, w1.T.astype(jnp.float32))              # (N*ni, N*nh)
    w2_bd = jnp.kron(eye, w2.T.astype(jnp.float32))              # (N*nh, N*no)

    flops = 2 * b * (n * ni) * (n * nh) + 2 * b * (n * nh) * (n * no)
    bytes_accessed = 4 * (b * n * (ni + no)
                          + (n * ni) * (n * nh) + (n * nh) * (n * no))

    out_flat = pl.pallas_call(
        _multilayer_kernel,
        out_shape=jax.ShapeDtypeStruct((b, n * no), jnp.float32),
        grid_spec=pltpu.PrefetchScalarGridSpec(
            num_scalar_prefetch=0,
            grid=(1,),                                 # single step: overhead-bound kernel
            in_specs=[
                pl.BlockSpec((b, n * ni), lambda i: (0, 0)),
                pl.BlockSpec((n * ni, n * nh), lambda i: (0, 0)),
                pl.BlockSpec((n * nh, n * no), lambda i: (0, 0)),
            ],
            out_specs=pl.BlockSpec((b, n * no), lambda i: (0, 0)),
        ),
        compiler_params=pltpu.CompilerParams(
            dimension_semantics=("arbitrary",)),
        cost_estimate=pl.CostEstimate(
            flops=flops,
            transcendentals=b * n * (nh + no),
            bytes_accessed=bytes_accessed),
    )(x_flat, w1_bd, w2_bd)

    # Layout plumbing back to (N, B, num_outputs).
    return jnp.transpose(out_flat.reshape(b, n, no), (1, 0, 2))


def multilayer_forward(x, w1, w2):
    """Single forward, same signature as the PyTorch module: x (B, num_inputs)."""
    return multilayer_forward_batched(x[None], w1, w2)[0]


if __name__ == "__main__":
    # Module defaults: num_inputs=3, num_hidden=3, num_outputs=3.
    num_inputs, num_hidden, num_outputs = 3, 3, 3
    batch = 8          # rows per forward; nn.Softmax(dim=0) normalizes over this axis
    n_instances = 64   # many forwards of the same module, fused under one pallas_call

    key = jax.random.PRNGKey(0)
    kx, kw1, kw2 = jax.random.split(key, 3)

    x = jax.random.normal(kx, (n_instances, batch, num_inputs), dtype=jnp.float32)
    # nn.init.normal_(mean=0, std=2.5) on weights of shape (out_features, in_features)
    w1 = 2.5 * jax.random.normal(kw1, (num_hidden, num_inputs), dtype=jnp.float32)
    w2 = 2.5 * jax.random.normal(kw2, (num_outputs, num_hidden), dtype=jnp.float32)

    # Batched path: one grid step, lane-dense (8, 192) block.
    out = jax.block_until_ready(multilayer_forward_batched(x, w1, w2))

    # Pure-JAX reference (same semantics as the PyTorch module, per instance).
    ref = jax.nn.softmax(jnp.tanh(x @ w1.T) @ w2.T, axis=1)
    assert jnp.allclose(out, ref, atol=2e-3, rtol=2e-3), "batched mismatch vs reference"
    # Exact divide in the kernel => each softmax column sums to 1 to f32 rounding.
    assert jnp.allclose(jnp.sum(out, axis=1),
                        jnp.ones((n_instances, num_outputs)), atol=1e-3)

    # Single-instance path (original module call signature).
    out1 = jax.block_until_ready(multilayer_forward(x[0], w1, w2))
    ref1 = jax.nn.softmax(jnp.tanh(x[0] @ w1.T) @ w2.T, axis=0)
    assert jnp.allclose(out1, ref1, atol=2e-3, rtol=2e-3), "single-instance mismatch"

    print("KERNEL_OK")
</pallas_src>

<mosaic_0001>
module attributes {stable_mosaic.version = 11 : i64} {
  func.func @_multilayer_kernel(%arg0: i32, %arg1: memref<8x192xf32, #tpu.memory_space<vmem>>, %arg2: memref<192x192xf32, #tpu.memory_space<vmem>>, %arg3: memref<192x192xf32, #tpu.memory_space<vmem>>, %arg4: memref<8x192xf32, #tpu.memory_space<vmem>>) attributes {dimension_semantics = [#tpu.dimension_semantics<arbitrary>], iteration_bounds = array<i64: 1>, scalar_prefetch = 0 : i64, scratch_operands = 0 : i64, tpu.core_type = #tpu.core_type<tc>, window_params = [{pipeline_mode = #tpu.pipeline_mode<synchronous>, transform_indices = @transform_0, window_bounds = array<i64: 8, 192>}, {pipeline_mode = #tpu.pipeline_mode<synchronous>, transform_indices = @transform_1, window_bounds = array<i64: 192, 192>}, {pipeline_mode = #tpu.pipeline_mode<synchronous>, transform_indices = @transform_2, window_bounds = array<i64: 192, 192>}, {pipeline_mode = #tpu.pipeline_mode<synchronous>, transform_indices = @transform_3, window_bounds = array<i64: 8, 192>}]} {
    %c0 = arith.constant 0 : index
    %c0_0 = arith.constant 0 : index
    %0 = vector.load %arg1[%c0, %c0_0] : memref<8x192xf32, #tpu.memory_space<vmem>>, vector<8x192xf32>
    %c0_1 = arith.constant 0 : index
    %c0_2 = arith.constant 0 : index
    %1 = vector.load %arg2[%c0_1, %c0_2] : memref<192x192xf32, #tpu.memory_space<vmem>>, vector<192x192xf32>
    %cst = arith.constant dense<0.000000e+00> : vector<8x192xf32>
    %2 = tpu.matmul %0, %1, %cst {dimension_numbers = #tpu.dot_dimension_numbers<[1], [0], [0], [1], [0, 0, 1, 1], [], []>} : vector<8x192xf32>, vector<192x192xf32>, vector<8x192xf32> -> vector<8x192xf32>
    %3 = math.tanh %2 : vector<8x192xf32>
    %c0_3 = arith.constant 0 : index
    %c0_4 = arith.constant 0 : index
    %4 = vector.load %arg3[%c0_3, %c0_4] : memref<192x192xf32, #tpu.memory_space<vmem>>, vector<192x192xf32>
    %cst_5 = arith.constant dense<0.000000e+00> : vector<8x192xf32>
    %5 = tpu.matmul %3, %4, %cst_5 {dimension_numbers = #tpu.dot_dimension_numbers<[1], [0], [0], [1], [0, 0, 1, 1], [], []>} : vector<8x192xf32>, vector<192x192xf32>, vector<8x192xf32> -> vector<8x192xf32>
    %cst_6 = arith.constant dense<0xFF800000> : vector<192xf32>
    %6 = vector.multi_reduction <maximumf>, %5, %cst_6 [0] : vector<8x192xf32> to vector<192xf32>
    %7 = vector.shape_cast %6 : vector<192xf32> to vector<1x192xf32>
    %8 = vector.broadcast %7 : vector<1x192xf32> to vector<8x192xf32>
    %9 = arith.subf %5, %8 : vector<8x192xf32>
    %10 = math.exp %9 : vector<8x192xf32>
    %cst_7 = arith.constant dense<0.000000e+00> : vector<192xf32>
    %11 = vector.multi_reduction <add>, %10, %cst_7 [0] : vector<8x192xf32> to vector<192xf32>
    %12 = vector.shape_cast %11 : vector<192xf32> to vector<1x192xf32>
    %13 = vector.broadcast %12 : vector<1x192xf32> to vector<8x192xf32>
    %14 = arith.divf %10, %13 : vector<8x192xf32>
    %c0_8 = arith.constant 0 : index
    %c0_9 = arith.constant 0 : index
    %15 = vector.load %arg4[%c0_8, %c0_9] : memref<8x192xf32, #tpu.memory_space<vmem>>, vector<8x192xf32>
    tpu.vector_store %arg4[%c0_8, %c0_9], %14 {strides = array<i32>} : memref<8x192xf32, #tpu.memory_space<vmem>>, vector<8x192xf32>,
    return
  }
  func.func @transform_0(%arg0: i32) -> (i32, i32) {
    %c0_i32 = arith.constant 0 : i32
    %c0_i32_0 = arith.constant 0 : i32
    %c0_i32_1 = arith.constant 0 : i32
    return %c0_i32, %c0_i32_0 : i32, i32
  }
  func.func @transform_1(%arg0: i32) -> (i32, i32) {
    %c0_i32 = arith.constant 0 : i32
    %c0_i32_0 = arith.constant 0 : i32
    %c0_i32_1 = arith.constant 0 : i32
    return %c0_i32, %c0_i32_0 : i32, i32
  }
  func.func @transform_2(%arg0: i32) -> (i32, i32) {
    %c0_i32 = arith.constant 0 : i32
    %c0_i32_0 = arith.constant 0 : i32
    %c0_i32_1 = arith.constant 0 : i32
    return %c0_i32, %c0_i32_0 : i32, i32
  }
  func.func @transform_3(%arg0: i32) -> (i32, i32) {
    %c0_i32 = arith.constant 0 : i32
    %c0_i32_0 = arith.constant 0 : i32
    %c0_i32_1 = arith.constant 0 : i32
    return %c0_i32, %c0_i32_0 : i32, i32
  }
}

</mosaic_0001>

<bundles_post_ra>
// kernel: multilayer_forward_batched.1
= control target key start
LH: loop header
LB: loop body
LE: loop exit
PB: predicated region body
PF: predicated region fallthrough
CT: control target
= control target key end

     0   :  { %vm64_vm0 = vcmask 523264   ;;  %s644_s1 = inlined_call_operand.vmem [shape: f32[192,192], index: 1, kind: input, shape index: {}]   ;;  %s645_s0 = inlined_call_operand.vmem [shape: f32[8,192], index: 0, kind: input, shape index: {}]   ;;  %s646_s2 = inlined_call_operand.vmem [shape: f32[192,192], index: 2, kind: input, shape index: {}]   ;;  %s647_s3 = inlined_call_operand.vmem [shape: f32[8,192], index: 3, kind: output, shape index: {}]  }
   0x1   :  { %v47_v0 = vld [vmem:[%s644_s1 + $0xf8] sm:$0xff]  ;;  %v46_v1 = vld [vmem:[%s644_s1 + $0xf0] sm:$0xff]  ;;  %v45_v2 = vld [vmem:[%s644_s1 + $0xe8] sm:$0xff] }
   0x2   :  { %68 = vmatprep.subr.mxu0 %v47_v0  ;;  %v44_v3 = vld [vmem:[%s644_s1 + $0xe0] sm:$0xff]  ;;  %v43_v4 = vld [vmem:[%s644_s1 + $0xd8] sm:$0xff]  ;;  %v42_v5 = vld [vmem:[%s644_s1 + $0xd0] sm:$0xff] }
   0x3   :  { %69 = vmatpush1.msra.mxu0 %v46_v1  ;;  %v41_v6 = vld [vmem:[%s644_s1 + $0xc8] sm:$0xff]  ;;  %v40_v7 = vld [vmem:[%s644_s1 + $0xc0] sm:$0xff]  ;;  %v39_v8 = vld [vmem:[%s644_s1 + $0xb8] sm:$0xff] }
   0x4   :  { %70 = vmatprep.subr.mxu0 %v45_v2  ;;  %v38_v9 = vld [vmem:[%s644_s1 + $0xb0] sm:$0xff]  ;;  %v37_v10 = vld [vmem:[%s644_s1 + $0xa8] sm:$0xff]  ;;  %v36_v11 = vld [vmem:[%s644_s1 + $0xa0] sm:$0xff] }
   0x5   :  { %71 = vmatpush1.msra.mxu0 %v44_v3  ;;  %v35_v12 = vld [vmem:[%s644_s1 + $0x98] sm:$0xff]  ;;  %v34_v13 = vld [vmem:[%s644_s1 + $0x90] sm:$0xff]  ;;  %v33_v14 = vld [vmem:[%s644_s1 + $0x88] sm:$0xff] }
   0x6   :  { %72 = vmatprep.subr.mxu0 %v43_v4  ;;  %v32_v15 = vld [vmem:[%s644_s1 + $0x80] sm:$0xff]  ;;  %v31_v16 = vld [vmem:[%s644_s1 + $0x78] sm:$0xff]  ;;  %v30_v17 = vld [vmem:[%s644_s1 + $0x70] sm:$0xff] }
   0x7   :  { %73 = vmatpush1.msra.mxu0 %v42_v5  ;;  %v29_v18 = vld [vmem:[%s644_s1 + $0x68] sm:$0xff]  ;;  %v172_v20 = vld [vmem:[%s646_s2 + $0xf8] sm:$0xff]  ;;  %v28_v21 = vld [vmem:[%s644_s1 + $0x60] sm:$0xff] }
   0x8   :  { %74 = vmatprep.subr.mxu0 %v41_v6  ;;  %v15_v19 = vld [vmem:[%s645_s0 + $0x8] sm:$0xff]  ;;  %v171_v22 = vld [vmem:[%s646_s2 + $0xf0] sm:$0xff]  ;;  %v27_v24 = vld [vmem:[%s644_s1 + $0x58] sm:$0xff]  ;;  %192 = vmatprep.subr.mxu1 %v172_v20 }
   0x9   :  { %75 = vmatpush1.msra.mxu0 %v40_v7  ;;  %305 = vmatprep.mubr.msk.f32.mxu0 %vm64_vm0, %v15_v19  ;;  %v170_v23 = vld [vmem:[%s646_s2 + $0xe8] sm:$0xff]  ;;  %v169_v25 = vld [vmem:[%s646_s2 + $0xe0] sm:$0xff]  ;;  %v26_v26 = vld [vmem:[%s644_s1 + $0x50] sm:$0xff] }
   0xa   :  { %76 = vmatprep.subr.mxu0 %v39_v8  ;;  %193 = vmatpush1.msra.mxu1 %v171_v22  ;;  %v168_v27 = vld [vmem:[%s646_s2 + $0xd8] sm:$0xff]  ;;  %v25_v28 = vld [vmem:[%s644_s1 + $0x48] sm:$0xff]  ;;  %v167_v29 = vld [vmem:[%s646_s2 + $0xd0] sm:$0xff] }
   0xb   :  { %77 = vmatpush1.msra.mxu0 %v38_v9  ;;  %194 = vmatprep.subr.mxu1 %v170_v23  ;;  %v24_v30 = vld [vmem:[%s644_s1 + $0x40] sm:$0xff]  ;;  %v166_v31 = vld [vmem:[%s646_s2 + $0xc8] sm:$0xff]  ;;  %v23_v32 = vld [vmem:[%s644_s1 + $0x38] sm:$0xff] }
   0xc   :  { %78 = vmatprep.subr.mxu0 %v37_v10  ;;  %195 = vmatpush1.msra.mxu1 %v169_v25  ;;  %v165_v33 = vld [vmem:[%s646_s2 + $0xc0] sm:$0xff]  ;;  %v22_v34 = vld [vmem:[%s644_s1 + $0x30] sm:$0xff]  ;;  %v164_v35 = vld [vmem:[%s646_s2 + $0xb8] sm:$0xff] }
   0xd   :  { %79 = vmatpush1.msra.mxu0 %v36_v11  ;;  %196 = vmatprep.subr.mxu1 %v168_v27  ;;  %v21_v36 = vld [vmem:[%s644_s1 + $0x28] sm:$0xff]  ;;  %v163_v37 = vld [vmem:[%s646_s2 + $0xb0] sm:$0xff]  ;;  %v20_v38 = vld [vmem:[%s644_s1 + $0x20] sm:$0xff] }
   0xe   :  { %80 = vmatprep.subr.mxu0 %v35_v12  ;;  %197 = vmatpush1.msra.mxu1 %v167_v29  ;;  %v162_v39 = vld [vmem:[%s646_s2 + $0xa8] sm:$0xff]  ;;  %v19_v40 = vld [vmem:[%s644_s1 + $0x18] sm:$0xff]  ;;  %v161_v41 = vld [vmem:[%s646_s2 + $0xa0] sm:$0xff] }
   0xf   :  { %81 = vmatpush1.msra.mxu0 %v34_v13  ;;  %198 = vmatprep.subr.mxu1 %v166_v31  ;;  %v18_v42 = vld [vmem:[%s644_s1 + $0x10] sm:$0xff]  ;;  %v160_v43 = vld [vmem:[%s646_s2 + $0x98] sm:$0xff]  ;;  %v17_v44 = vld [vmem:[%s644_s1 + $0x8] sm:$0xff] }
  0x10   :  { %82 = vmatprep.subr.mxu0 %v33_v14  ;;  %199 = vmatpush1.msra.mxu1 %v165_v33  ;;  %v159_v45 = vld [vmem:[%s646_s2 + $0x90] sm:$0xff]  ;;  %v16_v46 = vld [vmem:[%s644_s1] sm:$0xff]  ;;  %v158_v47 = vld [vmem:[%s646_s2 + $0x88] sm:$0xff] }
  0x11   :  { %83 = vmatpush1.msra.mxu0 %v32_v15  ;;  %200 = vmatprep.subr.mxu1 %v164_v35  ;;  %v63_v48 = vld [vmem:[%s644_s1 + $0x178] sm:$0xff]  ;;  %v157_v49 = vld [vmem:[%s646_s2 + $0x80] sm:$0xff]  ;;  %v62_v50 = vld [vmem:[%s644_s1 + $0x170] sm:$0xff] }
  0x12   :  { %84 = vmatprep.subr.mxu0 %v31_v16  ;;  %201 = vmatpush1.msra.mxu1 %v163_v37  ;;  %v156_v51 = vld [vmem:[%s646_s2 + $0x78] sm:$0xff]  ;;  %v61_v52 = vld [vmem:[%s644_s1 + $0x168] sm:$0xff]  ;;  %v155_v53 = vld [vmem:[%s646_s2 + $0x70] sm:$0xff] }
  0x13   :  { %85 = vmatpush1.msra.mxu0 %v30_v17  ;;  %202 = vmatprep.subr.mxu1 %v162_v39  ;;  %v60_v54 = vld [vmem:[%s644_s1 + $0x160] sm:$0xff]  ;;  %v154_v55 = vld [vmem:[%s646_s2 + $0x68] sm:$0xff]  ;;  %v59_v56 = vld [vmem:[%s644_s1 + $0x158] sm:$0xff] }
  0x14   :  { %86 = vmatprep.subr.mxu0 %v29_v18  ;;  %203 = vmatpush1.msra.mxu1 %v161_v41  ;;  %v153_v57 = vld [vmem:[%s646_s2 + $0x60] sm:$0xff]  ;;  %v58_v58 = vld [vmem:[%s644_s1 + $0x150] sm:$0xff]  ;;  %v152_v59 = vld [vmem:[%s646_s2 + $0x58] sm:$0xff] }
  0x15   :  { %87 = vmatpush1.msra.mxu0 %v28_v21  ;;  %204 = vmatprep.subr.mxu1 %v160_v43  ;;  %v57_v60 = vld [vmem:[%s644_s1 + $0x148] sm:$0xff]  ;;  %v151_v61 = vld [vmem:[%s646_s2 + $0x50] sm:$0xff]  ;;  %v56_v62 = vld [vmem:[%s644_s1 + $0x140] sm:$0xff] }
  0x16   :  { %88 = vmatprep.subr.mxu0 %v27_v24  ;;  %205 = vmatpush1.msra.mxu1 %v159_v45  ;;  %v150_v63 = vld [vmem:[%s646_s2 + $0x48] sm:$0xff]  ;;  %v55_v0 = vld [vmem:[%s644_s1 + $0x138] sm:$0xff]  ;;  %v149_v1 = vld [vmem:[%s646_s2 + $0x40] sm:$0xff] }
  0x17   :  { %89 = vmatpush1.msra.mxu0 %v26_v26  ;;  %206 = vmatprep.subr.mxu1 %v158_v47  ;;  %v54_v2 = vld [vmem:[%s644_s1 + $0x130] sm:$0xff]  ;;  %v148_v3 = vld [vmem:[%s646_s2 + $0x38] sm:$0xff]  ;;  %v53_v4 = vld [vmem:[%s644_s1 + $0x128] sm:$0xff] }
  0x18   :  { %90 = vmatprep.subr.mxu0 %v25_v28  ;;  %207 = vmatpush1.msra.mxu1 %v157_v49  ;;  %v147_v5 = vld [vmem:[%s646_s2 + $0x30] sm:$0xff]  ;;  %v52_v6 = vld [vmem:[%s644_s1 + $0x120] sm:$0xff]  ;;  %v146_v7 = vld [vmem:[%s646_s2 + $0x28] sm:$0xff] }
  0x19   :  { %91 = vmatpush1.msra.mxu0 %v24_v30  ;;  %208 = vmatprep.subr.mxu1 %v156_v51  ;;  %v51_v8 = vld [vmem:[%s644_s1 + $0x118] sm:$0xff]  ;;  %v145_v9 = vld [vmem:[%s646_s2 + $0x20] sm:$0xff]  ;;  %v50_v10 = vld [vmem:[%s644_s1 + $0x110] sm:$0xff] }
  0x1a   :  { %92 = vmatprep.subr.mxu0 %v23_v32  ;;  %209 = vmatpush1.msra.mxu1 %v155_v53  ;;  %v144_v11 = vld [vmem:[%s646_s2 + $0x18] sm:$0xff]  ;;  %v49_v12 = vld [vmem:[%s644_s1 + $0x108] sm:$0xff]  ;;  %v143_v13 = vld [vmem:[%s646_s2 + $0x10] sm:$0xff] }
  0x1b   :  { %93 = vmatpush1.msra.mxu0 %v22_v34  ;;  %210 = vmatprep.subr.mxu1 %v154_v55  ;;  %v48_v14 = vld [vmem:[%s644_s1 + $0x100] sm:$0xff]  ;;  %v142_v16 = vld [vmem:[%s646_s2 + $0x8] sm:$0xff]  ;;  %v188_v18 = vld [vmem:[%s646_s2 + $0x178] sm:$0xff] }
  0x1c   :  { %94 = vmatprep.subr.mxu0 %v21_v36  ;;  %211 = vmatpush1.msra.mxu1 %v153_v57  ;;  %v14_v15 = vld [vmem:[%s645_s0] sm:$0xff]  ;;  %v187_v19 = vld [vmem:[%s646_s2 + $0x170] sm:$0xff]  ;;  %v186_v20 = vld [vmem:[%s646_s2 + $0x168] sm:$0xff] }
  0x1d   :  { %95 = vmatpush1.msra.mxu0 %v20_v38  ;;  %212 = vmatprep.subr.mxu1 %v152_v59  ;;  %v141_v17 = vld [vmem:[%s646_s2] sm:$0xff]  ;;  %v184_v22 = vld [vmem:[%s646_s2 + $0x158] sm:$0xff]  ;;  %v183_v23 = vld [vmem:[%s646_s2 + $0x150] sm:$0xff] }
  0x1e   :  { %96 = vmatprep.subr.mxu0 %v19_v40  ;;  %213 = vmatpush1.msra.mxu1 %v151_v61  ;;  %v185_v21 = vld [vmem:[%s646_s2 + $0x160] sm:$0xff]  ;;  %v182_v24 = vld [vmem:[%s646_s2 + $0x148] sm:$0xff]  ;;  %v180_v26 = vld [vmem:[%s646_s2 + $0x138] sm:$0xff] }
  0x1f   :  { %97 = vmatpush1.msra.mxu0 %v18_v42  ;;  %214 = vmatprep.subr.mxu1 %v150_v63  ;;  %v181_v25 = vld [vmem:[%s646_s2 + $0x140] sm:$0xff]  ;;  %v179_v27 = vld [vmem:[%s646_s2 + $0x130] sm:$0xff]  ;;  %v178_v28 = vld [vmem:[%s646_s2 + $0x128] sm:$0xff] }
  0x20   :  { %98 = vmatprep.subr.mxu0 %v17_v44  ;;  %215 = vmatpush1.msra.mxu1 %v149_v1  ;;  %v177_v29 = vld [vmem:[%s646_s2 + $0x120] sm:$0xff]  ;;  %v176_v30 = vld [vmem:[%s646_s2 + $0x118] sm:$0xff]  ;;  %v175_v31 = vld [vmem:[%s646_s2 + $0x110] sm:$0xff] }
  0x21   :  { %99 = vmatpush1.msra.mxu0 %v16_v46  ;;  %216 = vmatprep.subr.mxu1 %v148_v3  ;;  %v174_v32 = vld [vmem:[%s646_s2 + $0x108] sm:$0xff]  ;;  %v173_v33 = vld [vmem:[%s646_s2 + $0x100] sm:$0xff] }
  0x22   :  { %116 = vmatprep.subr.mxu0 %v63_v48  ;;  %217 = vmatpush1.msra.mxu1 %v147_v5 }
  0x23   :  { %117 = vmatpush2.msra.mxu0 %v62_v50  ;;  %218 = vmatprep.subr.mxu1 %v146_v7 }
  0x24   :  { %118 = vmatprep.subr.mxu0 %v61_v52  ;;  %219 = vmatpush1.msra.mxu1 %v145_v9 }
  0x25   :  { %119 = vmatpush2.msra.mxu0 %v60_v54  ;;  %220 = vmatprep.subr.mxu1 %v144_v11 }
  0x26   :  { %120 = vmatprep.subr.mxu0 %v59_v56  ;;  %221 = vmatpush1.msra.mxu1 %v143_v13 }
  0x27   :  { %121 = vmatpush2.msra.mxu0 %v58_v58  ;;  %222 = vmatprep.subr.mxu1 %v142_v16 }
  0x28   :  { %122 = vmatprep.subr.mxu0 %v57_v60  ;;  %223 = vmatpush1.msra.mxu1 %v141_v17 }
  0x29   :  { %123 = vmatpush2.msra.mxu0 %v56_v62  ;;  %240 = vmatprep.subr.mxu1 %v188_v18 }
  0x2a   :  { %124 = vmatprep.subr.mxu0 %v55_v0  ;;  %241 = vmatpush2.msra.mxu1 %v187_v19 }
  0x2b   :  { %125 = vmatpush2.msra.mxu0 %v54_v2  ;;  %242 = vmatprep.subr.mxu1 %v186_v20 }
  0x2c   :  { %126 = vmatprep.subr.mxu0 %v53_v4  ;;  %243 = vmatpush2.msra.mxu1 %v185_v21 }
  0x2d   :  { %127 = vmatpush2.msra.mxu0 %v52_v6  ;;  %244 = vmatprep.subr.mxu1 %v184_v22 }
  0x2e   :  { %128 = vmatprep.subr.mxu0 %v51_v8  ;;  %245 = vmatpush2.msra.mxu1 %v183_v23 }
  0x2f   :  { %129 = vmatpush2.msra.mxu0 %v50_v10  ;;  %246 = vmatprep.subr.mxu1 %v182_v24 }
  0x30   :  { %130 = vmatprep.subr.mxu0 %v49_v12  ;;  %247 = vmatpush2.msra.mxu1 %v181_v25 }
  0x31   :  { %131 = vmatpush2.msra.mxu0 %v48_v14  ;;  %248 = vmatprep.subr.mxu1 %v180_v26 }
  0x32   :  { %133 = vmatmul.mubr.f32.vlgmr.msra.gmra.mxu0 %v14_v15  ;;  %249 = vmatpush2.msra.mxu1 %v179_v27 }
  0x33   :  { %250 = vmatprep.subr.mxu1 %v178_v28 }
  0x34   :  { %251 = vmatpush2.msra.mxu1 %v177_v29 }
  0x35   :  { %252 = vmatprep.subr.mxu1 %v176_v30 }
  0x36   :  { %253 = vmatpush2.msra.mxu1 %v175_v31 }
  0x37   :  { %254 = vmatprep.subr.mxu1 %v174_v32 }
  0x38   :  { %255 = vmatpush2.msra.mxu1 %v173_v33 }
  0xf2   :  { %v134_v34 = vpop.f32.mrf.mxu0 }
  0xf4   :  { %v136_v35 = vpop.f32.mrf.mxu0 }
  0xf5   :  { %307 = vtanh.f32 %v136_v35 }
  0xf6   :  { %309 = vtanh.f32 %v134_v34 }
 0x102   :  { %v308_v36 = vpop.eup %307 }
 0x103   :  { %v310_v37 = vpop.eup %309  ;;  %306 = vmatprep.mubr.msk.f32.mxu1 %vm64_vm0, %v308_v36 }
 0x104   :  { %257 = vmatmul.mubr.f32.vlgmr.msra.gmra.mxu1 %v310_v37 }
 0x1c4   :  { %v258_v38 = vpop.f32.mrf.mxu1 }
 0x1c5   :  { %v263_v39 = vrot.slane %v258_v38, 4 }
 0x1c6   :  { %v260_v40 = vpop.f32.mrf.mxu1 }
 0x1c7   :  { %v264_v41 = vmax.f32 %v258_v38, %v263_v39  ;;  %v269_v42 = vsel %vm64_vm0, %v260_v40, -inf }
 0x1c8   :  { %v270_v43 = vrot.slane %v269_v42, 4 }
 0x1c9   :  { %v265_v44 = vrot.slane %v264_v41, 2 }
 0x1ca   :  { %v271_v45 = vmax.f32 %v269_v42, %v270_v43 }
 0x1cb   :  { %v266_v46 = vmax.f32 %v264_v41, %v265_v44 }
 0x1cc   :  { %v272_v47 = vrot.slane %v271_v45, 2 }
 0x1cd   :  { %v267_v48 = vrot.slane %v266_v46, 1 }
 0x1ce   :  { %v273_v49 = vmax.f32 %v271_v45, %v272_v47 }
 0x1cf   :  { %v268_v50 = vmax.f32 %v266_v46, %v267_v48 }
 0x1d0   :  { %v274_v51 = vrot.slane %v273_v49, 1 }
 0x1d1   :  { %v276_v52 = vsub.f32 %v258_v38, %v268_v50 }
 0x1d2   :  { %v275_v53 = vmax.f32 %v273_v49, %v274_v51 }
 0x1d3   :  { %v278_v54 = vmul.f32 1.442695, %v276_v52 }
 0x1d4   :  { %v277_v55 = vsub.f32 %v260_v40, %v275_v53 }
 0x1d5   :  { %311 = vpow2.f32 %v278_v54 }
 0x1d6   :  { %v280_v56 = vmul.f32 1.442695, %v277_v55 }
 0x1d8   :  { %313 = vpow2.f32 %v280_v56 }
 0x1e2   :  { %v312_v57 = vpop.eup %311 }
 0x1e3   :  { %v282_v58 = vrot.slane %v312_v57, 4 }
 0x1e5   :  { %v314_v59 = vpop.eup %313  ;;  %v283_v60 = vadd.f32 %v312_v57, %v282_v58 }
 0x1e6   :  { %v288_v61 = vsel %vm64_vm0, %v314_v59, 0.0 }
 0x1e7   :  { %v284_v62 = vrot.slane %v283_v60, 2  ;;  %v289_v63 = vrot.slane %v288_v61, 4 }
 0x1e9   :  { %v285_v0 = vadd.f32 %v284_v62, %v283_v60  ;;  %v290_v1 = vadd.f32 %v289_v63, %v288_v61 }
 0x1eb   :  { %v286_v2 = vrot.slane %v285_v0, 1  ;;  %v291_v3 = vrot.slane %v290_v1, 2 }
 0x1ed   :  { %v287_v4 = vadd.f32 %v286_v2, %v285_v0  ;;  %v292_v5 = vadd.f32 %v291_v3, %v290_v1 }
 0x1ef   :  { %v293_v6 = vrot.slane %v292_v5, 1  ;;  %315 = vrcp.f32 %v287_v4 }
 0x1f1   :  { %v294_v7 = vadd.f32 %v293_v6, %v292_v5 }
 0x1f3   :  { %317 = vrcp.f32 %v294_v7 }
 0x1fc   :  { %v316_v8 = vpop.eup %315 }
 0x1fd   :  { %v296_v9 = vmul.f32 %v316_v8, %v312_v57 }
 0x1ff   :  { %299 = vst [vmem:[%s647_s3] sm:$0xff] %v296_v9 }
 0x200   :  { %v318_v10 = vpop.eup %317 }
 0x201   :  { %v298_v11 = vmul.f32 %v318_v10, %v314_v59 }
 0x203   :  { %300 = vst.msk [vmem:[%s647_s3 + $0x8] sm:$0xff] %vm64_vm0, %v298_v11 }

</bundles_post_ra>
